<compile_context>
chip_gen: v5e
topology: v5e:2x2
jax: 0.10.0
libtpu: 0.0.40
codegen_flags: <defaults>
</compile_context>

<pallas_src>
import functools

import jax
import jax.numpy as jnp
from jax.experimental import pallas as pl
from jax.experimental.pallas import tpu as pltpu


def _round_up(a, b):
    return (a + b - 1) // b * b


def _pick_tile(hw, tile_hw):
    """Pick the lane tile tn (multiple of 128) and the effective pixel width.

    Prefers a tn that divides hw exactly so x never needs an HBM pad copy."""
    tile_hw = max(128, (tile_hw // 128) * 128)
    if hw % 128 == 0:
        best = 0
        for m in range(128, min(tile_hw, hw) + 1, 128):
            if hw % m == 0:
                best = m
        if best:
            return best, hw                       # no padding needed
    tn = min(tile_hw, _round_up(hw, 128))
    return tn, _round_up(hw, tn)                  # ragged tail -> pad (rare)


def _repl_kernel(gt_ref, x_ref, embt_ref, out_ref, *, chunk):
    # gt_ref:(1,tn) i32  x_ref:(C,tn)  embt_ref:(C,K) f32  out_ref:(1,128) f32
    embt = embt_ref[...]                           # (C, K) prototypes, resident
    k = embt.shape[1]
    tn = gt_ref.shape[1]
    n_chunks = tn // chunk

    def body(i, acc):
        start = pl.multiple_of(i * chunk, chunk)   # chunk is a multiple of 128
        gt = gt_ref[:, pl.ds(start, chunk)]        # (1, chunk) labels, -1 = drop
        x = x_ref[:, pl.ds(start, chunk)].astype(jnp.float32)   # (C, chunk)
        # Gather e[gt] for every pixel via a one-hot matmul on the MXU.
        onehot = (jax.lax.broadcasted_iota(jnp.int32, (k, chunk), 0)
                  == gt).astype(jnp.float32)                     # (K, chunk)
        e_gt = jnp.dot(embt, onehot, preferred_element_type=jnp.float32)
        diff = x - e_gt
        sq = jnp.sum(diff * diff, axis=0, keepdims=True)         # (1, chunk)
        # gt == -1  =>  masked / invalid pixel contributes exactly 0.
        return acc + jnp.where(gt >= 0, sq, 0.0)

    acc = jax.lax.fori_loop(0, n_chunks, body,
                            jnp.zeros((1, chunk), jnp.float32))
    total = jnp.sum(acc, keepdims=True)                          # (1, 1)
    lane = jax.lax.broadcasted_iota(jnp.int32, (1, 128), 1)
    out_ref[...] = jnp.where(lane == 0, total, 0.0)              # lane-dense block


def reliable_euclidean_prototype_loss(x, gt, percent, entropy, emb_weight, *,
                                      tile_hw=16384, chunk=512):
    """x: (B, C, H, W), gt: (B, H, W) int, entropy: (B, H, W),
    emb_weight: (num_classes, C) f32 (init='normal' path, deterministic)."""
    B, C, H, W = x.shape
    K, D = emb_weight.shape
    assert D == C, "embedding_dim must equal channel count"
    HW = H * W
    N = B * HW

    # ---- plain-JAX glue -----------------------------------------------------
    if gt.ndim == 4:                              # (B,1,H',W') -> (B,H',W')
        gt = gt[:, 0]
    # gt nearest-resize to x's spatial dims, matching F.interpolate('nearest').
    if gt.shape[-2:] != (H, W):
        gh, gw = gt.shape[-2], gt.shape[-1]
        rows = (jnp.arange(H) * gh) // H
        cols = (jnp.arange(W) * gw) // W
        gt = gt[..., rows, :][..., :, cols]
    gt = gt.reshape(B, HW).astype(jnp.int32)

    # Entropy percentile threshold -> reliability mask (linear interpolation,
    # same as np.percentile default).
    # TODO(synk): jnp.percentile is a full sort over N in the wrapper; it may
    # dominate end-to-end time and is worth profiling separately.
    ent = entropy.reshape(N).astype(jnp.float32)
    thresh = jnp.percentile(ent, percent)
    reliable = (ent <= thresh).reshape(B, HW)
    # Fold the mask into gt; out-of-range labels (e.g. ignore_index=255) are
    # also dropped explicitly instead of producing mask*||x||^2.
    gt = jnp.where(reliable & (gt >= 0) & (gt < K), gt, -1)

    # ---- tiling of the pixel (lane) axis ------------------------------------
    tn, hw_eff = _pick_tile(HW, tile_hw)
    tpb = hw_eff // tn                            # tiles per batch image

    x3 = x.reshape(B, C, HW)                      # NCHW view: no transpose, no cast
    if hw_eff != HW:                              # ragged tail only (HW % 128 != 0)
        pad = hw_eff - HW
        x3 = jnp.pad(x3, ((0, 0), (0, 0), (0, pad)))
        gt = jnp.pad(gt, ((0, 0), (0, pad)), constant_values=-1)
    gt3 = gt.reshape(B, 1, hw_eff)
    embt = jnp.transpose(emb_weight).astype(jnp.float32)   # (C, K), tiny, resident

    # In-kernel lane sub-chunk (bounds onehot/e_gt/diff temporaries).
    chunk = max(c for c in (chunk, 512, 256, 128)
                if c <= tn and tn % c == 0 and c % 128 == 0)

    # Explicit VMEM budget: double-buffered x + gt blocks, out, prototypes,
    # chunk-bounded in-kernel temporaries, plus slack.
    x_bytes = C * tn * x.dtype.itemsize
    vmem_bytes = (2 * x_bytes + 2 * tn * 4 + 2 * 128 * 4 + 2 * C * K * 4
                  + (K + 3 * C + 4) * chunk * 4 + (2 << 20))
    vmem_limit = int(min(max(vmem_bytes, 16 << 20), 64 << 20))

    cost = pl.CostEstimate(
        flops=int(N * (2 * C * K + 3 * C + K)),
        transcendentals=0,
        bytes_accessed=int(B * C * hw_eff * x.dtype.itemsize
                           + B * hw_eff * 4 + B * tpb * 128 * 4),
    )

    partials = pl.pallas_call(
        functools.partial(_repl_kernel, chunk=chunk),
        out_shape=jax.ShapeDtypeStruct((B, 1, tpb * 128), jnp.float32),
        grid_spec=pltpu.PrefetchScalarGridSpec(
            num_scalar_prefetch=0,
            grid=(B, tpb),                                         # both parallel
            in_specs=[
                pl.BlockSpec((None, 1, tn), lambda b, j: (b, 0, j)),   # gt, lane-dense
                pl.BlockSpec((None, C, tn), lambda b, j: (b, 0, j)),   # x  (C, tn)
                pl.BlockSpec((C, K), lambda b, j: (0, 0)),             # emb^T, resident
            ],
            out_specs=pl.BlockSpec((None, 1, 128), lambda b, j: (b, 0, j)),
        ),
        compiler_params=pltpu.CompilerParams(
            dimension_semantics=("parallel", "parallel"),
            vmem_limit_bytes=vmem_limit),
        cost_estimate=cost,
    )(gt3, x3, embt)

    # F.mse_loss(reduction='mean') divides by numel = N * C (all pixels, not
    # just masked ones) -- matches the torch module.
    return jnp.sum(partials) / (N * C)


def _reference(x, gt, percent, entropy, emb_weight):
    """Plain-JAX mirror of the torch forward (masked MSE to gt prototypes)."""
    B, C, H, W = x.shape
    flat_x = jnp.transpose(x, (0, 2, 3, 1)).reshape(-1, C)
    flat_gt = gt.reshape(-1)
    ent = entropy.reshape(-1)
    thresh = jnp.percentile(ent, percent)
    mask = (ent <= thresh).astype(jnp.float32)[:, None]
    gt_embed = emb_weight[flat_gt]
    a = flat_x * mask
    b = gt_embed * mask
    return jnp.mean((a - b) ** 2)


if __name__ == "__main__":
    # Small, module-consistent shapes: x NCHW, embedding_dim == C.
    B, C, H, W = 2, 32, 16, 16
    num_classes = 8
    percent = 80.0

    key = jax.random.PRNGKey(0)
    kx, kg, ke, kw = jax.random.split(key, 4)
    x = jax.random.normal(kx, (B, C, H, W), dtype=jnp.float32)
    gt = jax.random.randint(kg, (B, H, W), 0, num_classes, dtype=jnp.int32)
    entropy = jax.random.uniform(ke, (B, H, W), dtype=jnp.float32)
    # nn.Embedding weight (num_classes, embedding_dim), init='normal' (deterministic).
    emb_weight = jax.random.normal(kw, (num_classes, C), dtype=jnp.float32)

    loss = reliable_euclidean_prototype_loss(
        x, gt, percent, entropy, emb_weight, tile_hw=16384)
    loss = jax.block_until_ready(loss)

    ref = _reference(x, gt, percent, entropy, emb_weight)
    assert jnp.allclose(loss, ref, rtol=1e-4, atol=1e-5), (loss, ref)
    print("KERNEL_OK")
</pallas_src>

<mosaic_0001>
module attributes {stable_mosaic.version = 11 : i64} {
  func.func @_repl_kernel(%arg0: i32, %arg1: i32, %arg2: memref<1x1x256xi32, #tpu.memory_space<vmem>>, %arg3: memref<1x32x256xf32, #tpu.memory_space<vmem>>, %arg4: memref<32x8xf32, #tpu.memory_space<vmem>>, %arg5: memref<1x1x128xf32, #tpu.memory_space<vmem>>) attributes {dimension_semantics = [#tpu.dimension_semantics<parallel>, #tpu.dimension_semantics<parallel>], iteration_bounds = array<i64: 2, 1>, scalar_prefetch = 0 : i64, scratch_operands = 0 : i64, tpu.core_type = #tpu.core_type<tc>, window_params = [{transform_indices = @transform_0, window_bounds = array<i64: 1, 1, 256>}, {transform_indices = @transform_1, window_bounds = array<i64: 1, 32, 256>}, {pipeline_mode = #tpu.pipeline_mode<synchronous>, transform_indices = @transform_2, window_bounds = array<i64: 32, 8>}, {transform_indices = @transform_3, window_bounds = array<i64: 1, 1, 128>}]} {
    %c0 = arith.constant 0 : index
    %c0_0 = arith.constant 0 : index
    %0 = vector.load %arg4[%c0, %c0_0] : memref<32x8xf32, #tpu.memory_space<vmem>>, vector<32x8xf32>
    %cst = arith.constant 0.000000e+00 : f32
    %1 = vector.broadcast %cst : f32 to vector<1x256xf32>
    %c0_i32 = arith.constant 0 : i32
    %c256_i32 = arith.constant 256 : i32
    %2 = arith.muli %c0_i32, %c256_i32 : i32
    %3 = tpu.assume_multiple %2, 256 : i32
    %c0_1 = arith.constant 0 : index
    %c0_2 = arith.constant 0 : index
    %4 = arith.index_cast %3 : i32 to index
    %5 = vector.load %arg2[%c0_1, %c0_2, %4] : memref<1x1x256xi32, #tpu.memory_space<vmem>>, vector<1x1x256xi32>
    %6 = vector.shape_cast %5 : vector<1x1x256xi32> to vector<1x256xi32>
    %c0_3 = arith.constant 0 : index
    %c0_4 = arith.constant 0 : index
    %7 = arith.index_cast %3 : i32 to index
    %8 = vector.load %arg3[%c0_3, %c0_4, %7] : memref<1x32x256xf32, #tpu.memory_space<vmem>>, vector<1x32x256xf32>
    %9 = vector.shape_cast %8 : vector<1x32x256xf32> to vector<32x256xf32>
    %10 = tpu.iota {dimensions = array<i32: 0>} : vector<8x256xi32>
    %11 = vector.broadcast %6 : vector<1x256xi32> to vector<8x256xi32>
    %12 = arith.cmpi eq, %10, %11 : vector<8x256xi32>
    %13 = arith.extui %12 : vector<8x256xi1> to vector<8x256xi32>
    %14 = arith.sitofp %13 : vector<8x256xi32> to vector<8x256xf32>
    %cst_5 = arith.constant dense<0.000000e+00> : vector<32x256xf32>
    %15 = tpu.matmul %0, %14, %cst_5 {dimension_numbers = #tpu.dot_dimension_numbers<[1], [0], [0], [1], [0, 0, 1, 1], [], []>} : vector<32x8xf32>, vector<8x256xf32>, vector<32x256xf32> -> vector<32x256xf32>
    %16 = arith.subf %9, %15 : vector<32x256xf32>
    %17 = arith.mulf %16, %16 : vector<32x256xf32>
    %cst_6 = arith.constant dense<0.000000e+00> : vector<256xf32>
    %18 = vector.multi_reduction <add>, %17, %cst_6 [0] : vector<32x256xf32> to vector<256xf32>
    %19 = vector.shape_cast %18 : vector<256xf32> to vector<1x256xf32>
    %c0_i32_7 = arith.constant 0 : i32
    %20 = vector.broadcast %c0_i32_7 : i32 to vector<1x256xi32>
    %21 = arith.cmpi sge, %6, %20 : vector<1x256xi32>
    %cst_8 = arith.constant 0.000000e+00 : f32
    %22 = vector.broadcast %cst_8 : f32 to vector<1x256xf32>
    %23 = arith.select %21, %19, %22 : vector<1x256xi1>, vector<1x256xf32>
    %24 = arith.addf %1, %23 : vector<1x256xf32>
    %c1_i32 = arith.constant 1 : i32
    %25 = vector.shape_cast %24 : vector<1x256xf32> to vector<1x1x256xf32>
    %cst_9 = arith.constant dense<0.000000e+00> : vector<1xf32>
    %26 = vector.multi_reduction <add>, %25, %cst_9 [1, 2] : vector<1x1x256xf32> to vector<1xf32>
    %27 = vector.shape_cast %26 : vector<1xf32> to vector<1x1x1xf32>
    %28 = vector.extract %27[0, 0, 0] : f32 from vector<1x1x1xf32>
    %29 = vector.broadcast %28 : f32 to vector<1x1xf32>
    %30 = tpu.iota {dimensions = array<i32: 1>} : vector<1x128xi32>
    %c0_i32_10 = arith.constant 0 : i32
    %31 = vector.broadcast %c0_i32_10 : i32 to vector<1x128xi32>
    %32 = arith.cmpi eq, %30, %31 : vector<1x128xi32>
    %cst_11 = arith.constant 0.000000e+00 : f32
    %33 = vector.shape_cast %29 : vector<1x1xf32> to vector<1x1xf32>
    %34 = vector.broadcast %33 : vector<1x1xf32> to vector<1x128xf32>
    %35 = vector.broadcast %cst_11 : f32 to vector<1x128xf32>
    %36 = arith.select %32, %34, %35 : vector<1x128xi1>, vector<1x128xf32>
    %c0_12 = arith.constant 0 : index
    %c0_13 = arith.constant 0 : index
    %c0_14 = arith.constant 0 : index
    %37 = vector.load %arg5[%c0_12, %c0_13, %c0_14] : memref<1x1x128xf32, #tpu.memory_space<vmem>>, vector<1x1x128xf32>
    %38 = vector.shape_cast %37 : vector<1x1x128xf32> to vector<1x128xf32>
    %39 = vector.shape_cast %36 : vector<1x128xf32> to vector<1x1x128xf32>
    tpu.vector_store %arg5[%c0_12, %c0_13, %c0_14], %39 {strides = array<i32>} : memref<1x1x128xf32, #tpu.memory_space<vmem>>, vector<1x1x128xf32>,
    return
  }
  func.func @transform_0(%arg0: i32, %arg1: i32) -> (i32, i32, i32) {
    %c0_i32 = arith.constant 0 : i32
    %c0_i32_0 = arith.constant 0 : i32
    return %arg0, %c0_i32, %arg1 : i32, i32, i32
  }
  func.func @transform_1(%arg0: i32, %arg1: i32) -> (i32, i32, i32) {
    %c0_i32 = arith.constant 0 : i32
    %c0_i32_0 = arith.constant 0 : i32
    return %arg0, %c0_i32, %arg1 : i32, i32, i32
  }
  func.func @transform_2(%arg0: i32, %arg1: i32) -> (i32, i32) {
    %c0_i32 = arith.constant 0 : i32
    %c0_i32_0 = arith.constant 0 : i32
    %c0_i32_1 = arith.constant 0 : i32
    return %c0_i32, %c0_i32_0 : i32, i32
  }
  func.func @transform_3(%arg0: i32, %arg1: i32) -> (i32, i32, i32) {
    %c0_i32 = arith.constant 0 : i32
    %c0_i32_0 = arith.constant 0 : i32
    return %arg0, %c0_i32, %arg1 : i32, i32, i32
  }
}

</mosaic_0001>

<bundles_post_ra>
// kernel: tpu_custom_call.1
= control target key start
LH: loop header
LB: loop body
LE: loop exit
PB: predicated region body
PF: predicated region fallthrough
CT: control target
= control target key end

     0   :  { %8 = vsyncpa [#allocation3], 0  ;;  %s903_s0 = inlined_call_operand.vmem [shape: s32[2,1,256], index: 0, kind: input, shape index: {}]   ;;  %s904_s1 = inlined_call_operand.hbm [shape: f32[2,32,256], index: 1, kind: input, shape index: {}]   ;;  %s905_s2 = inlined_call_operand.vmem [shape: f32[32,8], index: 2, kind: input, shape index: {}]   ;;  %s906_s3 = inlined_call_operand.hbm [shape: f32[2,1,128], index: 3, kind: output, shape index: {}]  }
   0x1   :  { %10 = vsyncpa [#allocation3 + $0x1], 0 }
   0x2   :  { %11 = vsyncpa [#allocation4], 0 }
   0x3   :  { %13 = vsyncpa [#allocation4 + $0x1], 0  ;;  %s740_s12 = smov 0   ;;  %s742_s13 = smov 0  }
   0x4   :  { %s744_s14 = smov 0   ;;  %s746_s15 = smov 0  }
   0x5   :  { %s748_s16 = smov 0   ;;  %s750_s17 = smov 0  }
   0x6 LB: > { %s509_s18 = sadd.s32 4294967295, %s715_s17   ;;  %s510_s19 = sadd.s32 4294967294, %s715_s17   ;;  %s715_s17 = sphi %s750_s17, %s19_s17   ;;  %s711_s16 = sphi %s748_s16, %s915_s16   ;;  %s707_s15 = sphi %s746_s15, %s914_s15   ;;  %s703_s14 = sphi %s744_s14, %s913_s14   ;;  %s699_s13 = sphi %s742_s13, %s912_s13   ;;  %s695_s12 = sphi %s740_s12, %s911_s12  }
   0x7   : > { %s31_s20 = sadd.s32 1, %s711_s16  ;;  %s68_s21 = sadd.s32 1, %s703_s14 }
   0x8   : > { %p33_p0 = scmp.ge.s32.totalorder %s31_s20, 2  ;;  %p75_p1 = scmp.ne.s32.totalorder %s703_s14, %s699_s13 }
   0x9   : > { %p76_p2 = scmp.eq.s32.totalorder %s715_s17, 0  ;;  %p81_p3 = scmp.ne.s32.totalorder %s699_s13, %s695_s12 }
   0xa   : > { %s917_s20 = smov (%p33_p0, %s31_s20), 0  ;;  %p82_p5 = scmp.eq.s32.totalorder %s509_s18, 0 }
   0xb   : > { %p781_p4 = por %p76_p2, %p75_p1  ;;  %s63_s23 = ssub.s32 %s711_s16, %s917_s20 }
   0xc   : > { %p128_p6 = scmp.eq.s32.totalorder %s509_s18, 1  ;;  %p66_p7 = scmp.eq.s32.totalorder %s63_s23, 0 }
   0xd   : > { %p787_p8 = por %p82_p5, %p81_p3  ;;  %p134_p10 = scmp.eq.s32.totalorder %s510_s19, 1 }
   0xe   : > { %p791_p9 = por %p128_p6, %p75_p1  ;;  %p512_p12 = scmp.ge.s32.totalorder %s715_s17, 2 }
   0xf   : > { %s796_s26 = scalar_select %p66_p7, %s703_s14, %s68_s21  }
  0x10   : > { %p798_p11 = por %p134_p10, %p81_p3  ;;  %p550_p13 = scmp.lt.s32.totalorder %s715_s17, 2 }
  0x11   : > { %s169_s28 = sand.u32 1, %s703_s14   ;;  %s533_s30 = sshll.u32 %s711_s16, 6 }
  0x12   : > { %s513_s29 = sshll.u32 %s169_s28, 6  ;;  %s180_s6 = scalar_lea.hbm %s904_s1, %s533_s30 }
  0x13   : > { %s173_s7 = scalar_lea.vmem [#allocation2], %s513_s29  ;;  %s181_s9 = sshll.u32 %s180_s6, 4  ;;  %s182_s9 = int_to_ptr.hbm [resolvable:$true] %s181_s9 }
  0x14   : > { %s183_s8 = sshll.u32 %s173_s7, 4  ;;  %p543_p0 = pnand %p550_p13, %p781_p4  ;;  %s184_s8 = int_to_ptr.vmem [resolvable:$true] %s183_s8 }
  0x15   : > { %p516_p1 = scmp.ge.s32.totalorder %s715_s17, 1  ;;  %s170_s10 = scalar_lea.sflag [#allocation3], %s169_s28 }
  0x16   : > { %s717_s11 = smov 256   ;;  %s718_s18 = smov 16  }
  0x17   : > { %545 = dma.hbm_to_vmem [thread:$0]  (!%p543_p0), %s182_s9, 1024, %s184_s8, %s170_s10, %s717_s11, %s717_s11, %s718_s18  }
  0x18   : > { %p191_p2 = scmp.lt.s32.totalorder %s715_s17, 3 }
  0x1a   : > { %p192_p3 = pnand %p516_p1, %p191_p2 }
  0x1b   : > { %s814_s19 = sand.u32 (!%p192_p3), 1, %s699_s13  }
  0x1c   : > { %195 = sbr.rel (%p192_p3) target bundleno = 397 (0x18d), region = 32  ;;  %s517_s21 = sshll.u32 (!%p192_p3), %s814_s19, 6 }
  0x1d   : > { %s198_s23 = scalar_lea.sflag (!%p192_p3), [#allocation3], %s814_s19  ;;  %s818_s29 = scalar_lea.vmem (!%p192_p3), [#allocation2], %s517_s21 }
  0x21   : > { %686 = dma.done.wait (%p787_p8), %s198_s23, 1024  }
  0x22   : > { %688 = vsyncadd (%p787_p8), %s198_s23, 4294966272  ;;  %p233_p4 = scmp.lt.s32.totalorder %s707_s15, 1  ;;  %v255_v0 = vlaneseq  ;;  %v242_v5 = vld [vmem:[%s905_s2] sm:$0xff]  ;;  %vm265_vm2 = vcmask 64512   ;;  %v244_v6 = vld [vmem:[%s905_s2 + $0x10] sm:$0xff]  ;;  %v719_v7 = vmov 1.0  }
  0x23   : > { %v243_v8 = vld [vmem:[%s905_s2 + $0x8] sm:$0xff]  ;;  %v245_v9 = vld [vmem:[%s905_s2 + $0x18] sm:$0xff]  ;;  %v247_v12 = vld [vmem:[%s818_s29] sm:$0xff]  ;;  %vm374_vm3 = vcmask 1040384   ;;  %s653_s8 = scalar_lea.hbm %s906_s3, 2 }
  0x24   : > { %s234_s22 = scalar_select %p233_p4, %s707_s15, 1  ;;  %v256_v1 = vshrl.u32 %v255_v0, 7  ;;  %v248_v13 = vld [vmem:[%s818_s29 + $0x8] sm:$0xff]  ;;  %v249_v15 = vld [vmem:[%s818_s29 + $0x10] sm:$0xff]  ;;  %v250_v18 = vld [vmem:[%s818_s29 + $0x18] sm:$0xff] }
  0x25   : > { %v251_v20 = vld [vmem:[%s818_s29 + $0x20] sm:$0xff]  ;;  %v252_v22 = vld [vmem:[%s818_s29 + $0x28] sm:$0xff]  ;;  %v253_v32 = vld [vmem:[%s818_s29 + $0x30] sm:$0xff] }
  0x26   : > { %s518_s28 = sshll.u32 %s234_s22, 1  ;;  %v254_v34 = vld [vmem:[%s818_s29 + $0x38] sm:$0xff]  ;;  %s412_s29 = scalar_lea.hbm %s906_s3, %s707_s15 }
  0x27   : > { %s239_s5 = scalar_lea.vmem %s903_s0, %s518_s28  ;;  %s231_s22 = scalar_lea.vmem [#allocation5], %s814_s19 }
  0x28   : > { %v830_v2 = vld [vmem:[%s239_s5] sm:$0x3]  ;;  %s414_s28 = sshll.u32 %s231_s22, 4  ;;  %s416_s30 = sshll.u32 %s412_s29, 4  ;;  %s415_s28 = int_to_ptr.vmem [resolvable:$true] %s414_s28  ;;  %s417_s30 = int_to_ptr.hbm [resolvable:$true] %s416_s30 }
  0x29   : > { %v257_v3 = vperm.slane %v830_v2, 0  ;;  %v258_v4 = vperm.slane %v830_v2, 1  ;;  %vm370_vm4 = vcmp.ge.s32.totalorder %v830_v2, 0  ;;  %v397_v2 = vand.u32 127, %v255_v0  ;;  %s403_s5 = scalar_lea.sflag [#allocation4], %s814_s19  ;;  %s647_s24 = sshra.s32 %s417_s30, 4  ;;  %s648_s24 = int_to_ptr.hbm [resolvable:$true] %s647_s24 }
  0x2a   : > { %s649_s6 = scalar_lea.hbm %s648_s24, 1  ;;  %p654_p8 = scmp.lt.s32.totalorder %s648_s24, %s906_s3 }
  0x2b   : > { %vm259_vm0 = vcmp.eq.s32.totalorder %v256_v1, %v257_v3  ;;  %vm260_vm1 = vcmp.eq.s32.totalorder %v256_v1, %v258_v4  ;;  %vm398_vm5 = vcmp.eq.s32.totalorder %v397_v2, 0  ;;  %p650_p5 = scmp.ne.s32.totalorder %s648_s24, %s649_s6  ;;  %p655_p10 = scmp.lt.s32.totalorder %s653_s8, %s649_s6 }
  0x2c   : > { %521 = vmatpush.msk.msra.mxu0 %vm259_vm0, %v719_v7  ;;  %534 = vmatpush.msk.msra.mxu2 %vm259_vm0, %v719_v7 }
  0x2d   : > { %526 = vmatpush.msk.msra.mxu1 %vm260_vm1, %v719_v7  ;;  %535 = vmatpush.msk.msra.mxu3 %vm260_vm1, %v719_v7  ;;  %p651_p6 = pnand %p650_p5, %p791_p9  ;;  %p656_p13 = por %p655_p10, %p654_p8 }
  0x2e   : > { %522 = vmatmul.msk.f32.vlgmr.msra.gmra.mxu0 %vm265_vm2, %v242_v5  ;;  %524 = vmatmul.msk.f32.vlgmr.msra.gmra.mxu2 %vm265_vm2, %v244_v6 }
  0x2f   : > { %527 = vmatmul.msk.f32.vlgmr.msra.gmra.mxu1 %vm265_vm2, %v242_v5  ;;  %529 = vmatmul.msk.f32.vlgmr.msra.gmra.mxu3 %vm265_vm2, %v244_v6  ;;  %p652_p7 = pneg %p651_p6 }
  0x31   : > { %p657_p0 = pnand %p656_p13, %p652_p7 }
  0x36   : > { %523 = vmatmul.msk.f32.gmra.mxu0 %vm265_vm2, %v243_v8  ;;  %525 = vmatmul.msk.f32.gmra.mxu2 %vm265_vm2, %v245_v9 }
  0x37   : > { %528 = vmatmul.msk.f32.gmra.mxu1 %vm265_vm2, %v243_v8  ;;  %530 = vmatmul.msk.f32.gmra.mxu3 %vm265_vm2, %v245_v9 }
  0xab   : > { %v295_v10 = vpop.f32.mrf.mxu0 }
  0xac   : > { %v324_v11 = vpop.f32.mrf.mxu1  ;;  %v336_v16 = vsub.f32 %v247_v12, %v295_v10 }
  0xad   : > { %v337_v19 = vsub.f32 %v248_v13, %v324_v11 }
  0xae   : > { %v344_v26 = vmul.f32 %v336_v16, %v336_v16 }
  0xaf   : > { %v345_v29 = vmul.f32 %v337_v19, %v337_v19 }
  0xb1   : > { %v301_v14 = vpop.f32.mrf.mxu2 }
  0xb2   : > { %v330_v17 = vpop.f32.mrf.mxu3  ;;  %v340_v27 = vsub.f32 %v251_v20, %v301_v14 }
  0xb3   : > { %v298_v21 = vpop.f32.mrf.mxu0  ;;  %v341_v30 = vsub.f32 %v252_v22, %v330_v17 }
  0xb4   : > { %v338_v23 = vsub.f32 %v249_v15, %v298_v21  ;;  %v327_v24 = vpop.f32.mrf.mxu1  ;;  %v348_v37 = vmul.f32 %v340_v27, %v340_v27 }
  0xb5   : > { %v339_v25 = vsub.f32 %v250_v18, %v327_v24  ;;  %v349_v40 = vmul.f32 %v341_v30, %v341_v30 }
  0xb6   : > { %v346_v28 = vmul.f32 %v338_v23, %v338_v23 }
  0xb7   : > { %v347_v31 = vmul.f32 %v339_v25, %v339_v25 }
  0xb8   : > { %v352_v33 = vadd.f32 %v346_v28, %v344_v26 }
  0xb9   : > { %v361_v35 = vadd.f32 %v347_v31, %v345_v29  ;;  %v304_v36 = vpop.f32.mrf.mxu2 }
  0xba   : > { %v342_v38 = vsub.f32 %v253_v32, %v304_v36  ;;  %v333_v39 = vpop.f32.mrf.mxu3  ;;  %v353_v43 = vadd.f32 %v352_v33, %v348_v37 }
  0xbb   : > { %v343_v41 = vsub.f32 %v254_v34, %v333_v39  ;;  %v362_v45 = vadd.f32 %v361_v35, %v349_v40 }
  0xbc   : > { %v350_v42 = vmul.f32 %v342_v38, %v342_v38 }
  0xbd   : > { %v351_v44 = vmul.f32 %v343_v41, %v343_v41 }
  0xbe   : > { %v354_v46 = vadd.f32 %v353_v43, %v350_v42 }
  0xbf   : > { %v363_v47 = vadd.f32 %v362_v45, %v351_v44 }
  0xc0   : > { %v355_v48 = vrot.slane %v354_v46, 4 }
  0xc1   : > { %v364_v49 = vrot.slane %v363_v47, 4 }
  0xc2   : > { %v356_v50 = vadd.f32 %v355_v48, %v354_v46 }
  0xc3   : > { %v365_v51 = vadd.f32 %v364_v49, %v363_v47 }
  0xc4   : > { %v357_v52 = vrot.slane %v356_v50, 2 }
  0xc5   : > { %v366_v53 = vrot.slane %v365_v51, 2 }
  0xc6   : > { %v358_v54 = vadd.f32 %v357_v52, %v356_v50 }
  0xc7   : > { %v367_v55 = vadd.f32 %v366_v53, %v365_v51 }
  0xc8   : > { %v359_v56 = vrot.slane %v358_v54, 1 }
  0xc9   : > { %v368_v57 = vrot.slane %v367_v55, 1 }
  0xca   : > { %v360_v59 = vadd.f32 %v359_v56, %v358_v54 }
  0xcb   : > { %v369_v58 = vadd.f32 %v368_v57, %v367_v55 }
  0xcd   : > { %v373_v60 = vrot.slane %v369_v58, 7 }
  0xcf   : > { %v375_v61 = vsel %vm374_vm3, %v360_v59, %v373_v60 }
  0xd0   : > { %v377_v62 = vsel %vm370_vm4, %v375_v61, 0.0 }
  0xd1   : > { %v380_v63 = vperm.slane %v377_v62, 0  ;;  %v381_v1 = vperm.slane %v377_v62, 1 }
  0xd3   : > { %v384_v3 = vsel %vm374_vm3, %v380_v63, 0.0  ;;  %v385_v4 = vsel %vm374_vm3, %v381_v1, 0.0 }
  0xd4   : > { %v386_v5 = vadd.f32 %v385_v4, %v384_v3 }
  0xd6   : > { %387 = vadd.xlane.f32.xlu0 %v386_v5 }
 0x149   : > { %v388_v6 = vpop.xlane.xlu0 %387 }
 0x14a   : > { %v389_v7 = vrot.slane %v388_v6, 4 }
 0x14c   : > { %v390_v8 = vadd.f32 %v389_v7, %v388_v6 }
 0x14e   : > { %v391_v9 = vrot.slane %v390_v8, 2 }
 0x150   : > { %v392_v10 = vadd.f32 %v391_v9, %v390_v8 }
 0x152   : > { %v393_v11 = vrot.slane %v392_v10, 1 }
 0x154   : > { %v394_v12 = vadd.f32 %v393_v11, %v392_v10 }
 0x156   : > { %536 = vpush %v394_v12 }
 0x187   : > { %s537_s4 = spop %536 }
 0x188   : > { %v399_v13 = vstv %s537_s4 }
 0x189   : > { %v400_v14 = vsel %vm398_vm5, %v399_v13, 0.0 }
 0x18a   : > { %401 = vst [vmem:[%s231_s22] sm:$0x1] %v400_v14 }
 0x18b   : > { %660 = shalt.err (!%p657_p0)
}
 0x18c   : > { %540 = dma.vmem_to_hbm [thread:$0]  (%p791_p9), %s415_s28, 16, %s417_s30, %s403_s5  }
 0x18d PF: > { %s428_s19 = sand.u32 1, %s695_s12   ;;  %p547_p1 = pnand %p512_p12, %p798_p11 }
 0x18e   : > { %s429_s11 = scalar_lea.sflag [#allocation4], %s428_s19 }
 0x18f   : > { %p548_p2 = pneg %p547_p1 }
 0x191   : > { %690 = dma.done.wait (%p548_p2), %s429_s11, 16  }
 0x192   : > { %692 = vsyncadd (%p548_p2), %s429_s11, 4294967280  ;;  %s19_s17 = sadd.s32 1, %s715_s17   ;;  %s911_s12 = smov %s699_s13 }
 0x193   : > { %p16_p3 = scmp.ge.s32.totalorder %s19_s17, 4   ;;  %s912_s13 = smov %s703_s14 }
 0x194   : > { %s913_s14 = smov %s796_s26  ;;  %s914_s15 = smov %s711_s16 }
 0x195   : > { %s915_s16 = smov %s917_s20  ;;  %18 = sbr.rel (!%p16_p3) target bundleno = 6 (0x6), region = 80 }
 0x19a   :  { %434 = vsyncpa [#allocation3], 1 }
 0x19b   :  { %436 = vsyncpa [#allocation3 + $0x1], 1 }
 0x19c   :  { %437 = vsyncpa [#allocation4], 1 }
 0x19d   :  { %439 = vsyncpa [#allocation4 + $0x1], 1 }

</bundles_post_ra>
